<compile_context>
chip_gen: v7x
topology: tpu7x:2x2x1
jax: 0.10.0
libtpu: 0.0.40
codegen_flags: <defaults>
</compile_context>

<pallas_src>
import functools
import math

import jax
import jax.numpy as jnp
from jax.experimental import pallas as pl
from jax.experimental.pallas import tpu as pltpu


def _round_up(x, m):
    return (x + m - 1) // m * m


def _cross_attention_kernel(qx_ref, vx_ref,
                            wq_ref, bq_ref,
                            wkv_ref, bkv_ref,
                            o_ref,
                            *, h_pad, compute_dtype, norm_output):
    bt, num_atom, in_pad = qx_ref.shape
    cast = lambda x: x.astype(compute_dtype)

    # Fold the bt samples into one tall LHS so the projection matmuls fill the
    # MXU (num_atom alone can be << the 128/256 systolic rows).  When num_atom
    # is a sublane multiple this reshape is layout-free.
    qx = qx_ref[...].reshape(bt * num_atom, in_pad)
    vx = vx_ref[...].reshape(bt * num_atom, in_pad)

    # --- Projections: 2 MXU matmuls (Q separate; K,V fused, shared LHS). ----
    # Weights already hold the folded 1/sqrt(attn_hidden) scale and are stored
    # in compute_dtype (pre-cast in pack_params).  Accumulation stays f32.
    q = jnp.dot(qx, wq_ref[...], preferred_element_type=jnp.float32) + bq_ref[...]
    kv = jnp.dot(vx, wkv_ref[...], preferred_element_type=jnp.float32) + bkv_ref[...]
    # h_pad is a multiple of 128 -> tile-aligned views, no lane-masked reads.
    k = kv[:, :h_pad]
    v = kv[:, h_pad:]

    q = q.reshape(bt, num_atom, h_pad)
    k = k.reshape(bt, num_atom, h_pad)
    v = v.reshape(bt, num_atom, h_pad)

    # --- Scores: batched Q @ K^T contracting the last dims (no K transpose). -
    scores = jnp.einsum("bqd,bkd->bqk", cast(q), cast(k),
                        preferred_element_type=jnp.float32)

    # --- Numerically stable softmax, kept in f32 (VPU/EUP). ------------------
    scores = scores - jnp.max(scores, axis=-1, keepdims=True)
    p = jnp.exp(scores)
    denom = jnp.sum(p, axis=-1, keepdims=True)
    # EUP approximate reciprocal + one Newton-Raphson step (~f32 accurate),
    # stays off the VALU divide path.
    r = pl.reciprocal(denom, approx=True)
    r = r * (2.0 - denom * r)

    # Padded columns of v are zero -> results for real columns are exact.
    if norm_output:
        # num_atom > h_pad: normalizing the (.., h_pad) output is cheaper.
        o = jnp.einsum("bqk,bkd->bqd", cast(p), cast(v),
                       preferred_element_type=jnp.float32) * r
    else:
        o = jnp.einsum("bqk,bkd->bqd", cast(p * r), cast(v),
                       preferred_element_type=jnp.float32)
    o_ref[...] = o.astype(o_ref.dtype)


def pack_params(params, *, compute_dtype=jnp.float32):
    """Pad, fuse, scale and (optionally) downcast the projection params once.

    wq/wk/wv: (input_size, attn_hidden) f32; bq/bk/bv: (attn_hidden,) f32
    (weights stored transposed relative to torch.nn.Linear).  The softmax
    1/sqrt(attn_hidden) scale is folded into wq/bq.  Weights are stored in
    `compute_dtype`; biases stay f32.  Zero padding keeps the math exact.
    """
    wq, bq = params["wq"], params["bq"]
    wk, bk = params["wk"], params["bk"]
    wv, bv = params["wv"], params["bv"]
    input_size, attn_hidden = wq.shape
    in_pad = _round_up(input_size, 128)
    h_pad = _round_up(attn_hidden, 128)
    scale = 1.0 / math.sqrt(attn_hidden)

    def pad_w(w):
        return jnp.pad(w, ((0, in_pad - input_size), (0, h_pad - attn_hidden)))

    def pad_b(b):
        return jnp.pad(b, (0, h_pad - attn_hidden)).reshape(1, h_pad)

    return {
        "wq": (pad_w(wq) * scale).astype(compute_dtype),
        "bq": (pad_b(bq) * scale).astype(jnp.float32),
        "wkv": jnp.concatenate([pad_w(wk), pad_w(wv)], axis=1).astype(compute_dtype),
        "bkv": jnp.concatenate([pad_b(bk), pad_b(bv)], axis=1).astype(jnp.float32),
        "input_size": input_size,
        "attn_hidden": attn_hidden,
        "in_pad": in_pad,
        "h_pad": h_pad,
        "compute_dtype": compute_dtype,
    }


def cross_attention(query_x, value_x, packed, *, out_dtype=jnp.float32):
    """query_x/value_x: (num_atom, input_size) or (B, num_atom, input_size).

    Returns (num_atom, attn_hidden) or (B, num_atom, attn_hidden) in out_dtype.
    `packed` is the output of pack_params().
    """
    compute_dtype = packed["compute_dtype"]
    squeeze = query_x.ndim == 2
    if squeeze:
        query_x = query_x[None]
        value_x = value_x[None]
    B, num_atom, input_size = query_x.shape
    assert input_size == packed["input_size"]
    in_pad, h_pad = packed["in_pad"], packed["h_pad"]
    attn_hidden = packed["attn_hidden"]

    # --- Batch folding: bt samples per grid step so bt*num_atom ~ 512 rows. --
    bt = max(1, min(B, 512 // max(num_atom, 1)))
    grid_b = -(-B // bt)
    if grid_b > 1 and grid_b % 2 == 1:          # keep both v7x cores balanced
        grid_b += 1
        bt = -(-B // grid_b)
        grid_b = -(-B // bt)
    b_pad = grid_b * bt

    # Pad + cast activations once (zero batch rows / feature columns -> exact
    # math; emitted directly in bf16 on the bf16 path; lane-dense last dim).
    pad = ((0, b_pad - B), (0, 0), (0, in_pad - input_size))
    qx = jnp.pad(query_x.astype(compute_dtype), pad)
    vx = jnp.pad(value_x.astype(compute_dtype), pad)

    kernel = functools.partial(
        _cross_attention_kernel,
        h_pad=h_pad, compute_dtype=compute_dtype,
        norm_output=num_atom > h_pad)

    act_spec = pl.BlockSpec((bt, num_atom, in_pad), lambda b: (b, 0, 0))

    def resident_spec(shape):
        # Constant index_map -> tile stays VMEM-resident across the grid.
        # Buffered(1): skip the second pipeline buffer (halves weight VMEM,
        # matters most on v7x's 64 MiB VMEM).
        try:
            return pl.BlockSpec(shape, lambda b: (0, 0),
                                pipeline_mode=pl.Buffered(1))
        except TypeError:   # older jax without pipeline_mode support
            return pl.BlockSpec(shape, lambda b: (0, 0))

    # Raise the scoped-VMEM limit only when this launch may exceed the default.
    cb = jnp.dtype(compute_dtype).itemsize
    est = (2 * 2 * bt * num_atom * in_pad * cb                   # qx,vx (x2 bufs)
           + in_pad * 3 * h_pad * cb + 3 * h_pad * 4             # weights+biases
           + 2 * bt * num_atom * h_pad * 4                       # output (x2 bufs)
           + bt * num_atom * (3 * h_pad + 2 * num_atom) * 4)     # q,k,v,scores,p
    compiler_kwargs = {"dimension_semantics": ("parallel",)}
    if est > 12 * 1024 * 1024:
        compiler_kwargs["vmem_limit_bytes"] = int(
            min(64 * 1024 * 1024, max(32 * 1024 * 1024, 2 * est)))
    # TODO(synk): flash-style query tiling (running max/sum) for num_atom >~ 1k
    # so the f32 (num_atom, num_atom) scores never exceed VMEM.

    out = pl.pallas_call(
        kernel,
        out_shape=jax.ShapeDtypeStruct((b_pad, num_atom, h_pad), out_dtype),
        grid=(grid_b,),
        in_specs=[
            act_spec,                                   # query_x tile
            act_spec,                                   # value_x tile
            resident_spec((in_pad, h_pad)),             # wq (scale folded in)
            resident_spec((1, h_pad)),                  # bq (scale folded in)
            resident_spec((in_pad, 2 * h_pad)),         # wkv = [Wk | Wv]
            resident_spec((1, 2 * h_pad)),              # bkv
        ],
        out_specs=pl.BlockSpec((bt, num_atom, h_pad), lambda b: (b, 0, 0)),
        compiler_params=pltpu.CompilerParams(**compiler_kwargs),
    )(qx, vx, packed["wq"], packed["bq"], packed["wkv"], packed["bkv"])

    out = out[:B, :, :attn_hidden]
    if squeeze:
        out = out[0]
    return out


def init_params(key, input_size, attn_hidden):
    """Deterministic nn.Linear-style init: U(-1/sqrt(in), 1/sqrt(in))."""
    bound = 1.0 / math.sqrt(input_size)
    keys = jax.random.split(key, 6)

    def u(k, shape):
        return jax.random.uniform(k, shape, jnp.float32, minval=-bound, maxval=bound)

    # Stored transposed relative to PyTorch ((in, out) instead of (out, in)).
    return {
        "wq": u(keys[0], (input_size, attn_hidden)), "bq": u(keys[1], (attn_hidden,)),
        "wk": u(keys[2], (input_size, attn_hidden)), "bk": u(keys[3], (attn_hidden,)),
        "wv": u(keys[4], (input_size, attn_hidden)), "bv": u(keys[5], (attn_hidden,)),
    }


def cross_attention_ref(query_x, value_x, params):
    def single(qx, vx):
        q = qx @ params["wq"] + params["bq"]
        k = vx @ params["wk"] + params["bk"]
        v = vx @ params["wv"] + params["bv"]
        s = (q @ k.T) / math.sqrt(params["wq"].shape[1])
        p = jax.nn.softmax(s, axis=-1)
        return p @ v

    if query_x.ndim == 2:
        return single(query_x, value_x)
    return jax.vmap(single)(query_x, value_x)


if __name__ == "__main__":
    batch, num_atom, input_size, attn_hidden = 4, 16, 32, 32

    key = jax.random.PRNGKey(0)
    k_q, k_v, k_p, k_q2, k_v2 = jax.random.split(key, 5)
    query_x = jax.random.normal(k_q, (batch, num_atom, input_size), jnp.float32)
    value_x = jax.random.normal(k_v, (batch, num_atom, input_size), jnp.float32)
    params = init_params(k_p, input_size, attn_hidden)

    packed_f32 = pack_params(params)                                  # f32 weights
    packed_bf16 = pack_params(params, compute_dtype=jnp.bfloat16)     # bf16 operands

    ref = cross_attention_ref(query_x, value_x, params)

    # Batched call: one pallas_call, batch folded into the grid block.
    out = jax.block_until_ready(cross_attention(query_x, value_x, packed_f32))
    assert out.shape == (batch, num_atom, attn_hidden)
    assert jnp.allclose(out, ref, atol=1e-4, rtol=1e-4)

    # Single-sample call (the original module's 2-D signature).
    out1 = jax.block_until_ready(cross_attention(query_x[0], value_x[0], packed_f32))
    assert out1.shape == (num_atom, attn_hidden)
    assert jnp.allclose(out1, ref[0], atol=1e-4, rtol=1e-4)

    # bf16 matmul operands + bf16 activation DMA; f32 accumulation / softmax.
    out_bf16 = jax.block_until_ready(
        cross_attention(query_x, value_x, packed_bf16))
    assert jnp.allclose(out_bf16, ref, atol=5e-2, rtol=5e-2)

    # num_atom > h_pad path (output-side softmax normalization) + batch padding
    # (B=5 folded as bt=3 -> grid of 2, last block has a zero-padded sample).
    q_big = jax.random.normal(k_q2, (5, 160, input_size), jnp.float32)
    v_big = jax.random.normal(k_v2, (5, 160, input_size), jnp.float32)
    ref_big = cross_attention_ref(q_big, v_big, params)
    out_big = jax.block_until_ready(cross_attention(q_big, v_big, packed_f32))
    assert out_big.shape == (5, 160, attn_hidden)
    assert jnp.allclose(out_big, ref_big, atol=1e-4, rtol=1e-4)

    print("KERNEL_OK")
</pallas_src>

<mosaic_0001>
module attributes {stable_mosaic.version = 11 : i64} {
  func.func @_cross_attention_kernel(%arg0: i32, %arg1: memref<4x16x128xf32, #tpu.memory_space<vmem>>, %arg2: memref<4x16x128xf32, #tpu.memory_space<vmem>>, %arg3: memref<128x128xf32, #tpu.memory_space<vmem>>, %arg4: memref<1x128xf32, #tpu.memory_space<vmem>>, %arg5: memref<128x256xf32, #tpu.memory_space<vmem>>, %arg6: memref<1x256xf32, #tpu.memory_space<vmem>>, %arg7: memref<4x16x128xf32, #tpu.memory_space<vmem>>) attributes {dimension_semantics = [#tpu.dimension_semantics<parallel>], iteration_bounds = array<i64: 1>, scalar_prefetch = 0 : i64, scratch_operands = 0 : i64, tpu.core_type = #tpu.core_type<tc>, window_params = [{transform_indices = @transform_0, window_bounds = array<i64: 4, 16, 128>}, {transform_indices = @transform_1, window_bounds = array<i64: 4, 16, 128>}, {pipeline_mode = #tpu.pipeline_mode<synchronous>, transform_indices = @transform_2, window_bounds = array<i64: 128, 128>}, {pipeline_mode = #tpu.pipeline_mode<synchronous>, transform_indices = @transform_3, window_bounds = array<i64: 1, 128>}, {pipeline_mode = #tpu.pipeline_mode<synchronous>, transform_indices = @transform_4, window_bounds = array<i64: 128, 256>}, {pipeline_mode = #tpu.pipeline_mode<synchronous>, transform_indices = @transform_5, window_bounds = array<i64: 1, 256>}, {transform_indices = @transform_6, window_bounds = array<i64: 4, 16, 128>}]} {
    %c0 = arith.constant 0 : index
    %c0_0 = arith.constant 0 : index
    %c0_1 = arith.constant 0 : index
    %0 = vector.load %arg1[%c0, %c0_0, %c0_1] : memref<4x16x128xf32, #tpu.memory_space<vmem>>, vector<4x16x128xf32>
    %1 = vector.shape_cast %0 : vector<4x16x128xf32> to vector<64x128xf32>
    %c0_2 = arith.constant 0 : index
    %c0_3 = arith.constant 0 : index
    %c0_4 = arith.constant 0 : index
    %2 = vector.load %arg2[%c0_2, %c0_3, %c0_4] : memref<4x16x128xf32, #tpu.memory_space<vmem>>, vector<4x16x128xf32>
    %3 = vector.shape_cast %2 : vector<4x16x128xf32> to vector<64x128xf32>
    %c0_5 = arith.constant 0 : index
    %c0_6 = arith.constant 0 : index
    %4 = vector.load %arg3[%c0_5, %c0_6] : memref<128x128xf32, #tpu.memory_space<vmem>>, vector<128x128xf32>
    %cst = arith.constant dense<0.000000e+00> : vector<64x128xf32>
    %5 = tpu.matmul %1, %4, %cst {dimension_numbers = #tpu.dot_dimension_numbers<[1], [0], [0], [1], [0, 0, 1, 1], [], []>} : vector<64x128xf32>, vector<128x128xf32>, vector<64x128xf32> -> vector<64x128xf32>
    %c0_7 = arith.constant 0 : index
    %c0_8 = arith.constant 0 : index
    %6 = vector.load %arg4[%c0_7, %c0_8] : memref<1x128xf32, #tpu.memory_space<vmem>>, vector<1x128xf32>
    %7 = vector.broadcast %6 : vector<1x128xf32> to vector<64x128xf32>
    %8 = arith.addf %5, %7 : vector<64x128xf32>
    %c0_9 = arith.constant 0 : index
    %c0_10 = arith.constant 0 : index
    %9 = vector.load %arg5[%c0_9, %c0_10] : memref<128x256xf32, #tpu.memory_space<vmem>>, vector<128x256xf32>
    %cst_11 = arith.constant dense<0.000000e+00> : vector<64x256xf32>
    %10 = tpu.matmul %3, %9, %cst_11 {dimension_numbers = #tpu.dot_dimension_numbers<[1], [0], [0], [1], [0, 0, 1, 1], [], []>} : vector<64x128xf32>, vector<128x256xf32>, vector<64x256xf32> -> vector<64x256xf32>
    %c0_12 = arith.constant 0 : index
    %c0_13 = arith.constant 0 : index
    %11 = vector.load %arg6[%c0_12, %c0_13] : memref<1x256xf32, #tpu.memory_space<vmem>>, vector<1x256xf32>
    %12 = vector.broadcast %11 : vector<1x256xf32> to vector<64x256xf32>
    %13 = arith.addf %10, %12 : vector<64x256xf32>
    %14 = vector.extract_strided_slice %13 {offsets = [0, 0], sizes = [64, 128], strides = [1, 1]} : vector<64x256xf32> to vector<64x128xf32>
    %15 = vector.extract_strided_slice %13 {offsets = [0, 128], sizes = [64, 128], strides = [1, 1]} : vector<64x256xf32> to vector<64x128xf32>
    %16 = vector.shape_cast %8 : vector<64x128xf32> to vector<4x16x128xf32>
    %17 = vector.shape_cast %14 : vector<64x128xf32> to vector<4x16x128xf32>
    %18 = vector.shape_cast %15 : vector<64x128xf32> to vector<4x16x128xf32>
    "tpu.trace_start"() <{level = 10 : i32, message = "bqd,bkd->bqk"}> : () -> ()
    %cst_14 = arith.constant dense<0.000000e+00> : vector<4x16x16xf32>
    %19 = tpu.matmul %16, %17, %cst_14 {dimension_numbers = #tpu.dot_dimension_numbers<[2], [2], [1], [1], [0, 0, 0, 1, 1, 1], [0], [0]>} : vector<4x16x128xf32>, vector<4x16x128xf32>, vector<4x16x16xf32> -> vector<4x16x16xf32>
    "tpu.trace_stop"() : () -> ()
    %cst_15 = arith.constant dense<0xFF800000> : vector<4x16xf32>
    %20 = vector.multi_reduction <maximumf>, %19, %cst_15 [2] : vector<4x16x16xf32> to vector<4x16xf32>
    %21 = vector.shape_cast %20 : vector<4x16xf32> to vector<4x16x1xf32>
    %22 = vector.broadcast %21 : vector<4x16x1xf32> to vector<4x16x16xf32>
    %23 = arith.subf %19, %22 : vector<4x16x16xf32>
    %24 = math.exp %23 : vector<4x16x16xf32>
    %cst_16 = arith.constant dense<0.000000e+00> : vector<4x16xf32>
    %25 = vector.multi_reduction <add>, %24, %cst_16 [2] : vector<4x16x16xf32> to vector<4x16xf32>
    %26 = vector.shape_cast %25 : vector<4x16xf32> to vector<4x16x1xf32>
    %27 = tpu.reciprocal %26 {approx = true} : vector<4x16x1xf32> -> vector<4x16x1xf32>
    %28 = arith.mulf %26, %27 : vector<4x16x1xf32>
    %cst_17 = arith.constant 2.000000e+00 : f32
    %29 = vector.broadcast %cst_17 : f32 to vector<4x16x1xf32>
    %30 = arith.subf %29, %28 : vector<4x16x1xf32>
    %31 = arith.mulf %27, %30 : vector<4x16x1xf32>
    %32 = vector.broadcast %31 : vector<4x16x1xf32> to vector<4x16x16xf32>
    %33 = arith.mulf %24, %32 : vector<4x16x16xf32>
    "tpu.trace_start"() <{level = 10 : i32, message = "bqk,bkd->bqd"}> : () -> ()
    %cst_18 = arith.constant dense<0.000000e+00> : vector<4x16x128xf32>
    %34 = tpu.matmul %33, %18, %cst_18 {dimension_numbers = #tpu.dot_dimension_numbers<[2], [1], [1], [2], [0, 0, 0, 1, 1, 2], [0], [0]>} : vector<4x16x16xf32>, vector<4x16x128xf32>, vector<4x16x128xf32> -> vector<4x16x128xf32>
    "tpu.trace_stop"() : () -> ()
    %c0_19 = arith.constant 0 : index
    %c0_20 = arith.constant 0 : index
    %c0_21 = arith.constant 0 : index
    %35 = vector.load %arg7[%c0_19, %c0_20, %c0_21] : memref<4x16x128xf32, #tpu.memory_space<vmem>>, vector<4x16x128xf32>
    tpu.vector_store %arg7[%c0_19, %c0_20, %c0_21], %34 {strides = array<i32>} : memref<4x16x128xf32, #tpu.memory_space<vmem>>, vector<4x16x128xf32>,
    return
  }
  func.func @transform_0(%arg0: i32) -> (i32, i32, i32) {
    %c0_i32 = arith.constant 0 : i32
    %c0_i32_0 = arith.constant 0 : i32
    %c0_i32_1 = arith.constant 0 : i32
    return %arg0, %c0_i32, %c0_i32_0 : i32, i32, i32
  }
  func.func @transform_1(%arg0: i32) -> (i32, i32, i32) {
    %c0_i32 = arith.constant 0 : i32
    %c0_i32_0 = arith.constant 0 : i32
    %c0_i32_1 = arith.constant 0 : i32
    return %arg0, %c0_i32, %c0_i32_0 : i32, i32, i32
  }
  func.func @transform_2(%arg0: i32) -> (i32, i32) {
    %c0_i32 = arith.constant 0 : i32
    %c0_i32_0 = arith.constant 0 : i32
    %c0_i32_1 = arith.constant 0 : i32
    return %c0_i32, %c0_i32_0 : i32, i32
  }
  func.func @transform_3(%arg0: i32) -> (i32, i32) {
    %c0_i32 = arith.constant 0 : i32
    %c0_i32_0 = arith.constant 0 : i32
    %c0_i32_1 = arith.constant 0 : i32
    return %c0_i32, %c0_i32_0 : i32, i32
  }
  func.func @transform_4(%arg0: i32) -> (i32, i32) {
    %c0_i32 = arith.constant 0 : i32
    %c0_i32_0 = arith.constant 0 : i32
    %c0_i32_1 = arith.constant 0 : i32
    return %c0_i32, %c0_i32_0 : i32, i32
  }
  func.func @transform_5(%arg0: i32) -> (i32, i32) {
    %c0_i32 = arith.constant 0 : i32
    %c0_i32_0 = arith.constant 0 : i32
    %c0_i32_1 = arith.constant 0 : i32
    return %c0_i32, %c0_i32_0 : i32, i32
  }
  func.func @transform_6(%arg0: i32) -> (i32, i32, i32) {
    %c0_i32 = arith.constant 0 : i32
    %c0_i32_0 = arith.constant 0 : i32
    %c0_i32_1 = arith.constant 0 : i32
    return %arg0, %c0_i32, %c0_i32_0 : i32, i32, i32
  }
}

</mosaic_0001>

<bundles_post_ra>
// kernel: tpu_custom_call.1
= control target key start
LH: loop header
LB: loop body
LE: loop exit
PB: predicated region body
PF: predicated region fallthrough
CT: control target
= control target key end

     0   :  { %11 = vsyncpa [#allocation3], 0  ;;  %s1796_s0 = inlined_call_operand.hbm [shape: f32[4,16,128], index: 0, kind: input, shape index: {}]   ;;  %s1797_s1 = inlined_call_operand.hbm [shape: f32[4,16,128], index: 1, kind: input, shape index: {}]   ;;  %s1798_s2 = inlined_call_operand.hbm [shape: f32[128,128], index: 2, kind: input, shape index: {}]   ;;  %s1799_s3 = inlined_call_operand.vmem [shape: f32[1,128], index: 3, kind: input, shape index: {}]   ;;  %s1800_s4 = inlined_call_operand.hbm [shape: f32[128,256], index: 4, kind: input, shape index: {}]   ;;  %s1801_s5 = inlined_call_operand.vmem [shape: f32[1,256], index: 5, kind: input, shape index: {}]   ;;  %s1802_s6 = inlined_call_operand.hbm [shape: f32[4,16,128], index: 6, kind: output, shape index: {}]  }
   0x1   :  { %12 = vsyncpa [#allocation6], 0 }
   0x2   :  { %13 = vsyncpa [#allocation9], 0 }
   0x3   :  { %14 = vsyncpa [#allocation4], 0  ;;  %s1565_s21 = smov [#allocation5]   ;;  %s1566_s23 = smov [#allocation2]  }
   0x4   :  { %s32_s22 = sshll.u32 %s1565_s21, 4  ;;  %s20_s24 = sshll.u32 %s1566_s23, 4  ;;  %s33_s22 = int_to_ptr.vmem [resolvable:$true] %s32_s22  ;;  %s1610_s24 = int_to_ptr.vmem [resolvable:$true] %s20_s24 }
   0x5   :  { %s1447_s27 = scalar_lea.hbm %s1797_s1, 1024 }
   0x6   :  { %p1448_p0 = scmp.ne.s32.totalorder %s1797_s1, %s1447_s27  ;;  %p1451_p1 = scmp.lt.u32.totalorder %s1447_s27, %s1797_s1 }
   0x8   :  { %p1453_p2 = pnand %p1451_p1, %p1448_p0 }
   0xa   :  { %1456 = shalt.err (!%p1453_p2)
}
   0xb   :  { %s1457_s8 = scalar_lea.vmem %s33_s22, 1024  ;;  %p1462_p4 = scmp.lt.s32.totalorder %s33_s22, %s33_s22 }
   0xc   :  { %p1458_p3 = scmp.ne.s32.totalorder %s33_s22, %s1457_s8  ;;  %p1463_p5 = scmp.lt.s32.totalorder %s1457_s8, %s1457_s8 }
   0xe   :  { %p1464_p6 = por %p1463_p5, %p1462_p4 }
  0x10   :  { %p1465_p7 = pnand %p1464_p6, %p1458_p3 }
  0x12   :  { %1468 = shalt.err (!%p1465_p7)
}
  0x13   :  { %s1567_s9 = smov 128   ;;  %s1568_s10 = smov 8  }
  0x14   :  { %38 = dma.hbm_to_vmem [thread:$0]  %s1797_s1, 1024, %s33_s22, [#allocation6], %s1567_s9, %s1567_s9, %s1568_s10  }
  0x15   :  { %s1469_s15 = scalar_lea.hbm %s1796_s0, 1024 }
  0x16   :  { %p1470_p8 = scmp.ne.s32.totalorder %s1796_s0, %s1469_s15  ;;  %p1473_p9 = scmp.lt.u32.totalorder %s1469_s15, %s1796_s0 }
  0x18   :  { %p1475_p10 = pnand %p1473_p9, %p1470_p8 }
  0x1a   :  { %1478 = shalt.err (!%p1475_p10)
}
  0x1b   :  { %s1479_s20 = scalar_lea.vmem %s1610_s24, 1024  ;;  %p1484_p12 = scmp.lt.s32.totalorder %s1610_s24, %s1610_s24 }
  0x1c   :  { %p1480_p11 = scmp.ne.s32.totalorder %s1610_s24, %s1479_s20  ;;  %p1485_p13 = scmp.lt.s32.totalorder %s1479_s20, %s1479_s20 }
  0x1e   :  { %p1486_p0 = por %p1485_p13, %p1484_p12 }
  0x20   :  { %p1487_p1 = pnand %p1486_p0, %p1480_p11 }
  0x22   :  { %1490 = shalt.err (!%p1487_p1)
}
  0x23   :  { %26 = dma.hbm_to_vmem [thread:$0]  %s1796_s0, 1024, %s1610_s24, [#allocation3], %s1567_s9, %s1567_s9, %s1568_s10  }
  0x24   :  { %s1569_s22 = smov [#allocation7]   ;;  %s1570_s25 = smov [#allocation8]  }
  0x25   :  { %s44_s23 = sshll.u32 %s1569_s22, 4  ;;  %s58_s26 = sshll.u32 %s1570_s25, 4  ;;  %s45_s23 = int_to_ptr.vmem [resolvable:$true] %s44_s23  ;;  %s1647_s26 = int_to_ptr.vmem [resolvable:$true] %s58_s26 }
  0x26   :  { %s1491_s29 = scalar_lea.hbm %s1798_s2, 2048 }
  0x27   :  { %p1492_p2 = scmp.ne.s32.totalorder %s1798_s2, %s1491_s29  ;;  %p1495_p3 = scmp.lt.u32.totalorder %s1491_s29, %s1798_s2 }
  0x29   :  { %p1497_p4 = pnand %p1495_p3, %p1492_p2 }
  0x2b   :  { %1500 = shalt.err (!%p1497_p4)
}
  0x2c   :  { %s1501_s0 = scalar_lea.vmem %s45_s23, 2048  ;;  %p1506_p6 = scmp.lt.s32.totalorder %s45_s23, %s45_s23 }
  0x2d   :  { %p1502_p5 = scmp.ne.s32.totalorder %s45_s23, %s1501_s0  ;;  %p1507_p7 = scmp.lt.s32.totalorder %s1501_s0, %s1501_s0 }
  0x2f   :  { %p1508_p8 = por %p1507_p7, %p1506_p6 }
  0x31   :  { %p1509_p9 = pnand %p1508_p8, %p1502_p5 }
  0x33   :  { %1512 = shalt.err (!%p1509_p9)
}
  0x34   :  { %50 = dma.hbm_to_vmem [thread:$0]  %s1798_s2, 2048, %s45_s23, [#allocation6], %s1567_s9, %s1567_s9, %s1568_s10  }
  0x35   :  { %s1513_s15 = scalar_lea.hbm %s1800_s4, 4096 }
  0x36   :  { %p1514_p10 = scmp.ne.s32.totalorder %s1800_s4, %s1513_s15  ;;  %p1517_p11 = scmp.lt.u32.totalorder %s1513_s15, %s1800_s4 }
  0x38   :  { %p1519_p12 = pnand %p1517_p11, %p1514_p10 }
  0x3a   :  { %1522 = shalt.err (!%p1519_p12)
}
  0x3b   :  { %s1523_s20 = scalar_lea.vmem %s1647_s26, 4096  ;;  %p1528_p0 = scmp.lt.s32.totalorder %s1647_s26, %s1647_s26 }
  0x3c   :  { %p1524_p13 = scmp.ne.s32.totalorder %s1647_s26, %s1523_s20  ;;  %p1529_p1 = scmp.lt.s32.totalorder %s1523_s20, %s1523_s20 }
  0x3e   :  { %p1530_p2 = por %p1529_p1, %p1528_p0 }
  0x40   :  { %p1531_p3 = pnand %p1530_p2, %p1524_p13 }
  0x42   :  { %1534 = shalt.err (!%p1531_p3)
}
  0x43   :  { %s1571_s2 = smov 256   ;;  %s1572_s1 = smov 16  }
  0x44   :  { %64 = dma.hbm_to_vmem [thread:$0]  %s1800_s4, 4096, %s1647_s26, [#allocation9], %s1571_s2, %s1571_s2, %s1572_s1  }
  0x45   :  { %1557 = dma.done.wait [#allocation3], 1024  }
  0x46   :  { %1558 = vsyncadd [#allocation3], 4294966272 }
  0x47   :  { %1559 = dma.done.wait [#allocation6], 3072  }
  0x48   :  { %1560 = vsyncadd [#allocation6], 4294964224 }
  0x49   :  { %1561 = dma.done.wait [#allocation9], 4096  }
  0x4a   :  { %1562 = vsyncadd [#allocation9], 4294963200  ;;  %v1573_v0 = vmov 0.0   ;;  %v224_v1 = vld [vmem:[#allocation8 + $0x8] sm:$0xff]  ;;  %v226_v2 = vld [vmem:[#allocation8 + $0x18] sm:$0xff]  ;;  %vm680_vm0 = vcmask 130048  }
  0x4b   :  { %331 = vmatprep.mubr.f32.mxu1 %v1573_v0  ;;  %v223_v3 = vld [vmem:[#allocation8] sm:$0xff]  ;;  %v1341_v4 = vpack.c.bf16 %v226_v2, %v224_v1  ;;  %v225_v5 = vld [vmem:[#allocation8 + $0x10] sm:$0xff]  ;;  %v228_v6 = vld [vmem:[#allocation8 + $0x28] sm:$0xff] }
  0x4c   :  { %v230_v7 = vld [vmem:[#allocation8 + $0x38] sm:$0xff]  ;;  %v1343_v8 = vpack.c.bf16 %v225_v5, %v223_v3  ;;  %v227_v10 = vld [vmem:[#allocation8 + $0x20] sm:$0xff]  ;;  %v229_v11 = vld [vmem:[#allocation8 + $0x30] sm:$0xff] }
  0x4d   :  { %v1345_v9 = vpack.c.bf16 %v230_v7, %v228_v6  ;;  %v232_v12 = vld [vmem:[#allocation8 + $0x48] sm:$0xff]  ;;  %1342 = vmatprep.subr.bf16.mxu1 %v1341_v4  ;;  %v234_v13 = vld [vmem:[#allocation8 + $0x58] sm:$0xff]  ;;  %v1347_v14 = vpack.c.bf16 %v229_v11, %v227_v10  ;;  %v95_v15 = vld [vmem:[#allocation7] sm:$0xff] }
  0x4e   :  { %1344 = vmatpush1.bf16.msra.mxu1 %v1343_v8  ;;  %v96_v16 = vld [vmem:[#allocation7 + $0x8] sm:$0xff]  ;;  %v1349_v17 = vpack.c.bf16 %v234_v13, %v232_v12  ;;  %v231_v18 = vld [vmem:[#allocation8 + $0x40] sm:$0xff]  ;;  %v233_v19 = vld [vmem:[#allocation8 + $0x50] sm:$0xff] }
  0x4f   :  { %1346 = vmatprep.subr.bf16.mxu1 %v1345_v9  ;;  %v1309_v20 = vpack.c.bf16 %v96_v16, %v95_v15  ;;  %v236_v21 = vld [vmem:[#allocation8 + $0x68] sm:$0xff]  ;;  %v238_v22 = vld [vmem:[#allocation8 + $0x78] sm:$0xff]  ;;  %v97_v23 = vld [vmem:[#allocation7 + $0x10] sm:$0xff]  ;;  %v1351_v26 = vpack.c.bf16 %v233_v19, %v231_v18 }
  0x50   :  { %v98_v24 = vld [vmem:[#allocation7 + $0x18] sm:$0xff]  ;;  %v99_v27 = vld [vmem:[#allocation7 + $0x20] sm:$0xff]  ;;  %v100_v28 = vld [vmem:[#allocation7 + $0x28] sm:$0xff]  ;;  %v1353_v29 = vpack.c.bf16 %v238_v22, %v236_v21 }
  0x51   :  { %1310 = vmatprep.subr.bf16.mxu0 %v1309_v20  ;;  %v1313_v25 = vpack.c.bf16 %v98_v24, %v97_v23  ;;  %v235_v30 = vld [vmem:[#allocation8 + $0x60] sm:$0xff]  ;;  %v237_v31 = vld [vmem:[#allocation8 + $0x70] sm:$0xff]  ;;  %v240_v32 = vld [vmem:[#allocation8 + $0x88] sm:$0xff]  ;;  %v1317_v33 = vpack.c.bf16 %v100_v28, %v99_v27 }
  0x52   :  { %1348 = vmatpush1.bf16.msra.mxu1 %v1347_v14  ;;  %1312 = vmatpush3.bf16.msra.mxu0 %v1309_v20  ;;  %v242_v34 = vld [vmem:[#allocation8 + $0x98] sm:$0xff]  ;;  %v101_v35 = vld [vmem:[#allocation7 + $0x30] sm:$0xff]  ;;  %v1355_v37 = vpack.c.bf16 %v237_v31, %v235_v30  ;;  %v239_v39 = vld [vmem:[#allocation8 + $0x80] sm:$0xff] }
  0x53   :  { %1350 = vmatprep.subr.bf16.mxu1 %v1349_v17  ;;  %1314 = vmatprep.subr.bf16.mxu0 %v1313_v25  ;;  %v102_v36 = vld [vmem:[#allocation7 + $0x38] sm:$0xff]  ;;  %v1357_v38 = vpack.c.bf16 %v242_v34, %v240_v32  ;;  %v241_v40 = vld [vmem:[#allocation8 + $0x90] sm:$0xff]  ;;  %v244_v41 = vld [vmem:[#allocation8 + $0xa8] sm:$0xff] }
  0x54   :  { %v1321_v42 = vpack.c.bf16 %v102_v36, %v101_v35  ;;  %v246_v43 = vld [vmem:[#allocation8 + $0xb8] sm:$0xff]  ;;  %v103_v44 = vld [vmem:[#allocation7 + $0x40] sm:$0xff]  ;;  %v104_v45 = vld [vmem:[#allocation7 + $0x48] sm:$0xff]  ;;  %v1359_v46 = vpack.c.bf16 %v241_v40, %v239_v39 }
  0x55   :  { %v243_v47 = vld [vmem:[#allocation8 + $0xa0] sm:$0xff]  ;;  %v1361_v48 = vpack.c.bf16 %v246_v43, %v244_v41  ;;  %v245_v49 = vld [vmem:[#allocation8 + $0xb0] sm:$0xff]  ;;  %v248_v50 = vld [vmem:[#allocation8 + $0xc8] sm:$0xff]  ;;  %v1325_v51 = vpack.c.bf16 %v104_v45, %v103_v44 }
  0x56   :  { %1352 = vmatpush1.bf16.msra.mxu1 %v1351_v26  ;;  %1316 = vmatpush3.bf16.msra.mxu0 %v1313_v25  ;;  %v79_v52 = vld [vmem:[#allocation2] sm:$0xff]  ;;  %v250_v53 = vld [vmem:[#allocation8 + $0xd8] sm:$0xff]  ;;  %v105_v54 = vld [vmem:[#allocation7 + $0x50] sm:$0xff]  ;;  %v1363_v56 = vpack.c.bf16 %v245_v49, %v243_v47  ;;  %v257_v26 = vlaneseq }
  0x57   :  { %1354 = vmatprep.subr.bf16.mxu1 %v1353_v29  ;;  %1318 = vmatprep.subr.bf16.mxu0 %v1317_v33  ;;  %v106_v55 = vld [vmem:[#allocation7 + $0x58] sm:$0xff]  ;;  %v1365_v57 = vpack.c.bf16 %v250_v53, %v248_v50  ;;  %v247_v58 = vld [vmem:[#allocation8 + $0xc0] sm:$0xff]  ;;  %v249_v59 = vld [vmem:[#allocation8 + $0xd0] sm:$0xff] }
  0x58   :  { %1241 = vmatprep.mubr.f32.mxu0 %v79_v52  ;;  %v252_v60 = vld [vmem:[#allocation8 + $0xe8] sm:$0xff]  ;;  %v1329_v61 = vpack.c.bf16 %v106_v55, %v105_v54  ;;  %v254_v62 = vld [vmem:[#allocation8 + $0xf8] sm:$0xff]  ;;  %v107_v63 = vld [vmem:[#allocation7 + $0x60] sm:$0xff]  ;;  %v1367_v2 = vpack.c.bf16 %v249_v59, %v247_v58  ;;  %v258_v27 = vshrl.u32 %v257_v26, 7 }
  0x59   :  { %v108_v1 = vld [vmem:[#allocation7 + $0x68] sm:$0xff]  ;;  %v1369_v3 = vpack.c.bf16 %v254_v62, %v252_v60  ;;  %v251_v4 = vld [vmem:[#allocation8 + $0xe0] sm:$0xff]  ;;  %v253_v5 = vld [vmem:[#allocation8 + $0xf0] sm:$0xff] }
  0x5a   :  { %1356 = vmatpush1.bf16.msra.mxu1 %v1355_v37  ;;  %1320 = vmatpush3.bf16.msra.mxu0 %v1317_v33  ;;  %v1333_v6 = vpack.c.bf16 %v108_v1, %v107_v63  ;;  %v109_v7 = vld [vmem:[#allocation7 + $0x70] sm:$0xff]  ;;  %v110_v8 = vld [vmem:[#allocation7 + $0x78] sm:$0xff]  ;;  %v1371_v9 = vpack.c.bf16 %v253_v5, %v251_v4  ;;  %v87_v11 = vld [vmem:[#allocation5] sm:$0xff]  ;;  %v259_v28 = vsub.s32 0, %v258_v27  ;;  %v263_v30 = vsub.s32 1, %v258_v27 }
  0x5b   :  { %1358 = vmatprep.subr.bf16.mxu1 %v1357_v38  ;;  %1322 = vmatprep.subr.bf16.mxu0 %v1321_v42  ;;  %v1337_v10 = vpack.c.bf16 %v110_v8, %v109_v7  ;;  %v88_v12 = vld [vmem:[#allocation5 + $0x8] sm:$0xff]  ;;  %v81_v14 = vld [vmem:[#allocation2 + $0x10] sm:$0xff]  ;;  %v82_v16 = vld [vmem:[#allocation2 + $0x18] sm:$0xff] }
  0x5c   :  { %v80_v13 = vld [vmem:[#allocation2 + $0x8] sm:$0xff]  ;;  %v89_v15 = vld [vmem:[#allocation5 + $0x10] sm:$0xff]  ;;  %v83_v17 = vld [vmem:[#allocation2 + $0x20] sm:$0xff] }
  0x5d   :  { %v90_v18 = vld [vmem:[#allocation5 + $0x18] sm:$0xff]  ;;  %v84_v19 = vld [vmem:[#allocation2 + $0x28] sm:$0xff]  ;;  %v85_v20 = vld [vmem:[#allocation2 + $0x30] sm:$0xff] }
  0x5e   :  { %1360 = vmatpush1.bf16.msra.mxu1 %v1359_v46  ;;  %1324 = vmatpush3.bf16.msra.mxu0 %v1321_v42  ;;  %v91_v21 = vld [vmem:[#allocation5 + $0x20] sm:$0xff]  ;;  %v86_v22 = vld [vmem:[#allocation2 + $0x38] sm:$0xff]  ;;  %v92_v23 = vld [vmem:[#allocation5 + $0x28] sm:$0xff] }
  0x5f   :  { %1362 = vmatprep.subr.bf16.mxu1 %v1361_v48  ;;  %1326 = vmatprep.subr.bf16.mxu0 %v1325_v51  ;;  %v93_v24 = vld [vmem:[#allocation5 + $0x30] sm:$0xff]  ;;  %v94_v25 = vld [vmem:[#allocation5 + $0x38] sm:$0xff]  ;;  %v255_v29 = vld [vmem:[%s1801_s5] sm:$0x3] }
  0x60   :  { %v1692_v32 = vrot.slane %v255_v29, %v259_v28  ;;  %v1694_v34 = vrot.slane %v255_v29, %v263_v30 }
  0x62   :  { %1364 = vmatpush1.bf16.msra.mxu1 %v1363_v56  ;;  %1328 = vmatpush3.bf16.msra.mxu0 %v1325_v51 }
  0x63   :  { %1366 = vmatprep.subr.bf16.mxu1 %v1365_v57  ;;  %1330 = vmatprep.subr.bf16.mxu0 %v1329_v61 }
  0x66   :  { %1368 = vmatpush1.bf16.msra.mxu1 %v1367_v2  ;;  %1332 = vmatpush3.bf16.msra.mxu0 %v1329_v61 }
  0x67   :  { %1370 = vmatprep.subr.bf16.mxu1 %v1369_v3  ;;  %1334 = vmatprep.subr.bf16.mxu0 %v1333_v6 }
  0x6a   :  { %1372 = vmatpush1.bf16.msra.mxu1 %v1371_v9  ;;  %1336 = vmatpush3.bf16.msra.mxu0 %v1333_v6 }
  0x6b   :  { %1338 = vmatprep.subr.bf16.mxu0 %v1337_v10 }
  0x6d   :  { %332 = vmatmul.mubr.f32.vlgmr.msra.gmra.mrb[0].mxu1 %v87_v11 }
  0x6e   :  { %337 = vmatprep.mubr.f32.mxu1 %v1573_v0  ;;  %1340 = vmatpush3.bf16.msra.mxu0 %v1337_v10 }
  0x71   :  { %338 = vmatmul.mubr.f32.gmra.mrb[2].mxu1 %v88_v12  ;;  %1242 = vmatmul.mubr.f32.vlgmr.msra.gmra.mrb[0].mxu0 %v80_v13 }
  0x72   :  { %343 = vmatprep.mubr.f32.mxu1 %v1573_v0  ;;  %1244 = vmatprep.mubr.f32.mxu0 %v81_v14 }
  0x75   :  { %344 = vmatmul.mubr.f32.gmra.mrb[4].mxu1 %v89_v15  ;;  %1245 = vmatmul.mubr.f32.gmra.mrb[2].mxu0 %v82_v16 }
  0x76   :  { %349 = vmatprep.mubr.f32.mxu1 %v1573_v0  ;;  %1247 = vmatprep.mubr.f32.mxu0 %v83_v17 }
  0x79   :  { %350 = vmatmul.mubr.f32.gmra.mrb[6].mxu1 %v90_v18  ;;  %1248 = vmatmul.mubr.f32.gmra.mrb[4].mxu0 %v84_v19 }
  0x7a   :  { %355 = vmatprep.mubr.f32.mxu1 %v1573_v0  ;;  %1250 = vmatprep.mubr.f32.mxu0 %v85_v20 }
  0x7d   :  { %356 = vmatmul.mubr.f32.gmra.mrb[8].mxu1 %v91_v21  ;;  %1251 = vmatmul.mubr.f32.gmra.mrb[6].mxu0 %v86_v22 }
  0x7e   :  { %361 = vmatprep.mubr.f32.mxu1 %v1573_v0 }
  0x81   :  { %362 = vmatmul.mubr.f32.gmra.mrb[10].mxu1 %v92_v23 }
  0x82   :  { %367 = vmatprep.mubr.f32.mxu1 %v1573_v0 }
  0x85   :  { %368 = vmatmul.mubr.f32.gmra.mrb[12].mxu1 %v93_v24 }
  0x86   :  { %373 = vmatprep.mubr.f32.mxu1 %v1573_v0  ;;  %v1699_v0 = vld [vmem:[%s1799_s3] ss:$0 sm:$0xff]  ;;  %s1574_s3 = smov [#allocation10]  }
  0x87   :  { %s1130_s5 = sshll.u32 %s1574_s3, 4  ;;  %s1131_s5 = int_to_ptr.vmem [resolvable:$true] %s1130_s5 }
  0x88   :  { %s1535_s27 = scalar_lea.vmem %s1131_s5, 1024  ;;  %p1540_p5 = scmp.lt.s32.totalorder %s1131_s5, %s1131_s5 }
  0x89   :  { %374 = vmatmul.mubr.f32.gmra.mrb[14].mxu1 %v94_v25  ;;  %p1536_p4 = scmp.ne.s32.totalorder %s1131_s5, %s1535_s27  ;;  %p1541_p6 = scmp.lt.s32.totalorder %s1535_s27, %s1535_s27 }
  0x8b   :  { %p1542_p7 = por %p1541_p6, %p1540_p5 }
  0x8d   :  { %p1543_p8 = pnand %p1542_p7, %p1536_p4 }
 0x140   :  { %v333_v31 = vpop.f32.mrb[0].mxu1 }
 0x141   :  { %v335_v33 = vpop.f32.mrb[1].mxu1  ;;  %v334_v37 = vadd.f32 %v333_v31, %v1692_v32 }
 0x142   :  { %v336_v41 = vadd.f32 %v335_v33, %v1694_v34 }
 0x144   :  { %v339_v35 = vpop.f32.mrb[2].mxu1  ;;  %v1243_v36 = vpop.f32.mrb[0].mxu0 }
 0x145   :  { %v340_v38 = vadd.f32 %v339_v35, %v1692_v32  ;;  %v341_v39 = vpop.f32.mrb[3].mxu1  ;;  %v184_v40 = vpop.f32.mrb[1].mxu0  ;;  %v190_v53 = vadd.f32 %v1243_v36, %v1699_v0 }
 0x146   :  { %v342_v42 = vadd.f32 %v341_v39, %v1694_v34  ;;  %v185_v43 = vadd.f32 %v1699_v0, %v184_v40 }
 0x147   :  { %v1373_v44 = vpack.c.bf16 %v340_v38, %v334_v37 }
 0x148   :  { %v1389_v45 = vpack.c.bf16 %v342_v42, %v336_v41  ;;  %v345_v46 = vpop.f32.mrb[4].mxu1  ;;  %1257 = vmatprep.mubr.f32.mxu0 %v185_v43  ;;  %v1246_v47 = vpop.f32.mrb[2].mxu0 }
 0x149   :  { %v347_v48 = vpop.f32.mrb[5].mxu1  ;;  %1374 = vmatprep.subr.bf16.mxu0 %v1373_v44  ;;  %v194_v49 = vpop.f32.mrb[3].mxu0  ;;  %v346_v52 = vadd.f32 %v345_v46, %v1692_v32  ;;  %v200_v6 = vadd.f32 %v1246_v47, %v1699_v0 }
 0x14a   :  { %1376 = vmatpush3.bf16.xpose.msra.mxu0 %v1373_v44  ;;  %v348_v57 = vadd.f32 %v347_v48, %v1694_v34  ;;  %v195_v59 = vadd.f32 %v1699_v0, %v194_v49 }
 0x14c   :  { %v351_v50 = vpop.f32.mrb[6].mxu1  ;;  %v1249_v51 = vpop.f32.mrb[4].mxu0 }
 0x14d   :  { %v352_v54 = vadd.f32 %v351_v50, %v1692_v32  ;;  %v353_v55 = vpop.f32.mrb[7].mxu1  ;;  %v204_v56 = vpop.f32.mrb[5].mxu0  ;;  %v210_v18 = vadd.f32 %v1249_v51, %v1699_v0 }
 0x14e   :  { %v354_v58 = vadd.f32 %v353_v55, %v1694_v34  ;;  %v205_v11 = vadd.f32 %v1699_v0, %v204_v56 }
 0x14f   :  { %v1377_v60 = vpack.c.bf16 %v352_v54, %v346_v52 }
 0x150   :  { %v1393_v61 = vpack.c.bf16 %v354_v58, %v348_v57  ;;  %v357_v62 = vpop.f32.mrb[8].mxu1  ;;  %v1252_v63 = vpop.f32.mrb[6].mxu0 }
 0x151   :  { %v359_v1 = vpop.f32.mrb[9].mxu1  ;;  %1258 = vmatmul.mubr.f32.vlgmr.msra.gmra.mrb[8].mxu0 %v190_v53  ;;  %1378 = vmatprep.subr.bf16.mxu0 %v1377_v60  ;;  %v214_v2 = vpop.f32.mrb[7].mxu0  ;;  %v358_v5 = vadd.f32 %v357_v62, %v1692_v32  ;;  %v220_v25 = vadd.f32 %v1252_v63, %v1699_v0 }
 0x152   :  { %1380 = vmatpush3.bf16.xpose.msra.mxu0 %v1377_v60  ;;  %1264 = vmatprep.mubr.f32.mxu0 %v195_v59  ;;  %v215_v3 = vadd.f32 %v1699_v0, %v214_v2  ;;  %v360_v9 = vadd.f32 %v359_v1, %v1694_v34 }
 0x154   :  { %v363_v4 = vpop.f32.mrb[10].mxu1  ;;  %1278 = vmatprep.mubr.f32.mxu1 %v215_v3 }
 0x155   :  { %v364_v7 = vadd.f32 %v363_v4, %v1692_v32  ;;  %v365_v8 = vpop.f32.mrb[11].mxu1 }
 0x156   :  { %v366_v10 = vadd.f32 %v365_v8, %v1694_v34 }
 0x157   :  { %v1381_v12 = vpack.c.bf16 %v364_v7, %v358_v5 }
 0x158   :  { %v1719_v13 = vpack.c.bf16 %v366_v10, %v360_v9  ;;  %v369_v14 = vpop.f32.mrb[12].mxu1 }
 0x159   :  { %v371_v15 = vpop.f32.mrb[13].mxu1  ;;  %1265 = vmatmul.mubr.f32.vlgmr.msra.gmra.mrb[10].mxu0 %v200_v6  ;;  %1382 = vmatprep.subr.bf16.mxu0 %v1381_v12  ;;  %v370_v17 = vadd.f32 %v369_v14, %v1692_v32 }
 0x15a   :  { %1384 = vmatpush3.bf16.xpose.msra.mxu0 %v1381_v12  ;;  %1271 = vmatprep.mubr.f32.mxu0 %v205_v11  ;;  %v372_v21 = vadd.f32 %v371_v15, %v1694_v34 }
 0x15b   :  { %1390 = vmatprep.subr.bf16.mxu0 %v1389_v45 }
 0x15c   :  { %v375_v16 = vpop.f32.mrb[14].mxu1 }
 0x15d   :  { %v376_v19 = vadd.f32 %v375_v16, %v1692_v32  ;;  %v377_v20 = vpop.f32.mrb[15].mxu1 }
 0x15e   :  { %v378_v22 = vadd.f32 %v377_v20, %v1694_v34 }
 0x15f   :  { %v1385_v23 = vpack.c.bf16 %v376_v19, %v370_v17 }
 0x160   :  { %v1726_v24 = vpack.c.bf16 %v378_v22, %v372_v21 }
 0x161   :  { %1272 = vmatmul.mubr.f32.vlgmr.msra.gmra.mrb[12].mxu0 %v210_v18  ;;  %1386 = vmatprep.subr.bf16.mxu1 %v1385_v23 }
 0x162   :  { %1388 = vmatpush3.bf16.xpose.msra.mxu1 %v1385_v23  ;;  %1392 = vmatpush3.bf16.msra.mxu0 %v1389_v45 }
 0x163   :  { %1394 = vmatprep.subr.bf16.mxu1 %v1393_v61  ;;  %1398 = vmatprep.subr.bf16.mxu0 %v1719_v13 }
 0x169   :  { %1279 = vmatmul.mubr.f32.vlgmr.msra.gmra.mrb[16].mxu1 %v220_v25 }
 0x16a   :  { %1396 = vmatpush3.bf16.msra.mxu1 %v1393_v61 }
 0x16b   :  { %1402 = vmatprep.subr.bf16.mxu1 %v1726_v24 }
 0x224   :  { %v1259_v26 = vpop.f32.mrb[8].mxu0 }
 0x225   :  { %v446_v27 = vpop.f32.mrb[9].mxu0  ;;  %v684_v28 = vsel %vm680_vm0, %v1259_v26, -inf }
 0x226   :  { %685 = vmax.xlane.f32.xlu1 %v684_v28  ;;  %v681_v29 = vsel %vm680_vm0, %v446_v27, -inf }
 0x227   :  { %682 = vmax.xlane.f32.xlu0 %v681_v29 }
 0x22c   :  { %v1266_v30 = vpop.f32.mrb[10].mxu0 }
 0x22d   :  { %v521_v31 = vpop.f32.mrb[11].mxu0  ;;  %v690_v32 = vsel %vm680_vm0, %v1266_v30, -inf }
 0x22e   :  { %691 = vmax.xlane.f32.xlu1 %v690_v32  ;;  %v687_v33 = vsel %vm680_vm0, %v521_v31, -inf }
 0x22f   :  { %688 = vmax.xlane.f32.xlu0 %v687_v33 }
 0x234   :  { %v1273_v34 = vpop.f32.mrb[12].mxu0 }
 0x235   :  { %v596_v0 = vpop.f32.mrb[13].mxu0  ;;  %v696_v36 = vsel %vm680_vm0, %v1273_v34, -inf }
 0x236   :  { %v693_v35 = vsel %vm680_vm0, %v596_v0, -inf }
 0x237   :  { %694 = vmax.xlane.f32.xlu0 %v693_v35 }
 0x23b   :  { %697 = vmax.xlane.f32.xlu0 %v696_v36 }
 0x23c   :  { %v1280_v37 = vpop.f32.mrb[16].mxu1 }
 0x23d   :  { %v671_v38 = vpop.f32.mrb[17].mxu1  ;;  %v702_v40 = vsel %vm680_vm0, %v1280_v37, -inf }
 0x23e   :  { %v699_v39 = vsel %vm680_vm0, %v671_v38, -inf }
 0x23f   :  { %700 = vmax.xlane.f32.xlu1 %v699_v39 }
 0x243   :  { %703 = vmax.xlane.f32.xlu1 %v702_v40 }
 0x2b3   :  { %v686_v41 = vpop.xlane.xlu1 %685 }
 0x2b4   :  { %v706_v42 = vsub.f32 %v1259_v26, %v686_v41  ;;  %v683_v43 = vpop.xlane.xlu0 %682 }
 0x2b5   :  { %v705_v44 = vsub.f32 %v446_v27, %v683_v43 }
 0x2b6   :  { %v715_v45 = vmul.f32 1.442695, %v706_v42 }
 0x2b7   :  { %v713_v46 = vmul.f32 1.442695, %v705_v44 }
 0x2b8   :  { %1415 = vpow2.f32 %v715_v45 }
 0x2b9   :  { %1417 = vpow2.f32 %v713_v46 }
 0x2bb   :  { %v692_v47 = vpop.xlane.xlu1 %691 }
 0x2bc   :  { %v708_v48 = vsub.f32 %v1266_v30, %v692_v47  ;;  %v689_v49 = vpop.xlane.xlu0 %688 }
 0x2bd   :  { %v707_v50 = vsub.f32 %v521_v31, %v689_v49 }
 0x2be   :  { %v719_v51 = vmul.f32 1.442695, %v708_v48 }
 0x2bf   :  { %v717_v52 = vmul.f32 1.442695, %v707_v50 }
 0x2c0   :  { %1419 = vpow2.f32 %v719_v51 }
 0x2c1   :  { %1421 = vpow2.f32 %v717_v52 }
 0x2c2   :  { %v1739_v53 = vpop.eup %1415 }
 0x2c3   :  { %v732_v54 = vsel %vm680_vm0, %v1739_v53, 0.0  ;;  %v1418_v55 = vpop.eup %1417 }
 0x2c4   :  { %733 = vadd.xlane.f32.xlu0 %v732_v54  ;;  %v695_v56 = vpop.xlane.xlu0 %694  ;;  %v729_v59 = vsel %vm680_vm0, %v1418_v55, 0.0 }
 0x2c5   :  { %v709_v57 = vsub.f32 %v596_v0, %v695_v56 }
 0x2c7   :  { %v721_v58 = vmul.f32 1.442695, %v709_v57 }
 0x2c8   :  { %730 = vadd.xlane.f32.xlu0 %v729_v59  ;;  %v698_v60 = vpop.xlane.xlu0 %697 }
 0x2c9   :  { %1423 = vpow2.f32 %v721_v58  ;;  %v710_v61 = vsub.f32 %v1273_v34, %v698_v60 }
 0x2ca   :  { %v1744_v62 = vpop.eup %1419 }
 0x2cb   :  { %v723_v63 = vmul.f32 1.442695, %v710_v61  ;;  %v738_v1 = vsel %vm680_vm0, %v1744_v62, 0.0  ;;  %v1748_v2 = vpop.eup %1421 }
 0x2cc   :  { %739 = vadd.xlane.f32.xlu1 %v738_v1  ;;  %v701_v3 = vpop.xlane.xlu1 %700  ;;  %v735_v6 = vsel %vm680_vm0, %v1748_v2, 0.0 }
 0x2cd   :  { %1425 = vpow2.f32 %v723_v63  ;;  %v711_v4 = vsub.f32 %v671_v38, %v701_v3 }
 0x2cf   :  { %v725_v5 = vmul.f32 1.442695, %v711_v4 }
 0x2d0   :  { %v704_v7 = vpop.xlane.xlu1 %703  ;;  %736 = vadd.xlane.f32.xlu1 %v735_v6 }
 0x2d1   :  { %1427 = vpow2.f32 %v725_v5  ;;  %v712_v8 = vsub.f32 %v1280_v37, %v704_v7 }
 0x2d3   :  { %v1424_v9 = vpop.eup %1423  ;;  %v727_v10 = vmul.f32 1.442695, %v712_v8 }
 0x2d4   :  { %v741_v11 = vsel %vm680_vm0, %v1424_v9, 0.0 }
 0x2d5   :  { %1429 = vpow2.f32 %v727_v10  ;;  %742 = vadd.xlane.f32.xlu0 %v741_v11 }
 0x2d7   :  { %v1753_v12 = vpop.eup %1425 }
 0x2d8   :  { %v744_v14 = vsel %vm680_vm0, %v1753_v12, 0.0 }
 0x2d9   :  { %745 = vadd.xlane.f32.xlu0 %v744_v14 }
 0x2db   :  { %v1757_v15 = vpop.eup %1427 }
 0x2dc   :  { %v747_v16 = vsel %vm680_vm0, %v1757_v15, 0.0 }
 0x2dd   :  { %748 = vadd.xlane.f32.xlu1 %v747_v16 }
 0x2df   :  { %v1761_v17 = vpop.eup %1429 }
 0x2e0   :  { %v750_v18 = vsel %vm680_vm0, %v1761_v17, 0.0 }
 0x2e1   :  { %751 = vadd.xlane.f32.xlu1 %v750_v18 }
 0x351   :  { %v734_v19 = vpop.xlane.xlu0 %733 }
 0x352   :  { %1431 = vrcp.f32 %v734_v19 }
 0x355   :  { %v731_v20 = vpop.xlane.xlu0 %730 }
 0x356   :  { %1433 = vrcp.f32 %v731_v20 }
 0x359   :  { %v740_v21 = vpop.xlane.xlu1 %739 }
 0x35a   :  { %1435 = vrcp.f32 %v740_v21 }
 0x35c   :  { %v1432_v22 = vpop.eup %1431 }
 0x35d   :  { %v762_v23 = vmul.f32 %v1432_v22, %v734_v19  ;;  %v737_v25 = vpop.xlane.xlu1 %736 }
 0x35e   :  { %1437 = vrcp.f32 %v737_v25 }
 0x35f   :  { %v770_v27 = vsub.f32 2.0, %v762_v23 }
 0x360   :  { %v1434_v26 = vpop.eup %1433 }
 0x361   :  { %v761_v28 = vmul.f32 %v1434_v26, %v731_v20  ;;  %v778_v32 = vmul.f32 %v1432_v22, %v770_v27 }
 0x362   :  { %v743_v29 = vpop.xlane.xlu0 %742 }
 0x363   :  { %v769_v30 = vsub.f32 2.0, %v761_v28  ;;  %1439 = vrcp.f32 %v743_v29  ;;  %v786_v37 = vmul.f32 %v1739_v53, %v778_v32 }
 0x364   :  { %v1436_v31 = vpop.eup %1435 }
 0x365   :  { %v777_v33 = vmul.f32 %v1434_v26, %v769_v30  ;;  %v764_v34 = vmul.f32 %v1436_v31, %v740_v21 }
 0x366   :  { %v746_v0 = vpop.xlane.xlu0 %745 }
 0x367   :  { %v785_v35 = vmul.f32 %v1418_v55, %v777_v33  ;;  %1441 = vrcp.f32 %v746_v0  ;;  %v772_v38 = vsub.f32 2.0, %v764_v34 }
 0x368   :  { %v1438_v36 = vpop.eup %1437 }
 0x369   :  { %v763_v39 = vmul.f32 %v1438_v36, %v737_v25  ;;  %1285 = vmatprep.mubr.msk.f32.mxu0 %vm680_vm0, %v785_v35  ;;  %v780_v42 = vmul.f32 %v1436_v31, %v772_v38 }
 0x36a   :  { %v749_v40 = vpop.xlane.xlu1 %748  ;;  %1286 = vmatmul.mubr.msk.f32.vlgmr.msra.gmra.mrb[14].mxu0 %vm680_vm0, %v786_v37 }
 0x36b   :  { %v771_v41 = vsub.f32 2.0, %v763_v39  ;;  %1443 = vrcp.f32 %v749_v40  ;;  %1400 = vmatpush3.bf16.msra.mxu0 %v1719_v13  ;;  %v788_v48 = vmul.f32 %v1744_v62, %v780_v42 }
 0x36d   :  { %v1440_v43 = vpop.eup %1439  ;;  %v779_v44 = vmul.f32 %v1438_v36, %v771_v41 }
 0x36e   :  { %v765_v45 = vmul.f32 %v1440_v43, %v743_v29  ;;  %v752_v46 = vpop.xlane.xlu1 %751 }
 0x36f   :  { %v787_v47 = vmul.f32 %v1748_v2, %v779_v44  ;;  %1445 = vrcp.f32 %v752_v46 }
 0x370   :  { %v773_v49 = vsub.f32 2.0, %v765_v45 }
 0x371   :  { %v1442_v50 = vpop.eup %1441  ;;  %1292 = vmatprep.mubr.msk.f32.mxu1 %vm680_vm0, %v787_v47 }
 0x372   :  { %v781_v51 = vmul.f32 %v1440_v43, %v773_v49  ;;  %v766_v52 = vmul.f32 %v1442_v50, %v746_v0  ;;  %1293 = vmatmul.mubr.msk.f32.vlgmr.msra.gmra.mrb[18].mxu1 %vm680_vm0, %v788_v48 }
 0x373   :  { %1404 = vmatpush3.bf16.msra.mxu1 %v1726_v24 }
 0x374   :  { %v789_v13 = vmul.f32 %v1424_v9, %v781_v51  ;;  %v774_v53 = vsub.f32 2.0, %v766_v52 }
 0x375   :  { %v1444_v54 = vpop.eup %1443 }
 0x376   :  { %v782_v55 = vmul.f32 %v1442_v50, %v774_v53  ;;  %v767_v56 = vmul.f32 %v1444_v54, %v749_v40  ;;  %1299 = vmatprep.mubr.msk.f32.mxu0 %vm680_vm0, %v789_v13 }
 0x378   :  { %v790_v57 = vmul.f32 %v1753_v12, %v782_v55  ;;  %v775_v58 = vsub.f32 2.0, %v767_v56 }
 0x379   :  { %v1446_v59 = vpop.eup %1445 }
 0x37a   :  { %v783_v60 = vmul.f32 %v1444_v54, %v775_v58  ;;  %v768_v61 = vmul.f32 %v1446_v59, %v752_v46  ;;  %1300 = vmatmul.mubr.msk.f32.vlgmr.msra.gmra.mrb[16].mxu0 %vm680_vm0, %v790_v57 }
 0x37c   :  { %v791_v62 = vmul.f32 %v1757_v15, %v783_v60  ;;  %v776_v63 = vsub.f32 2.0, %v768_v61 }
 0x37e   :  { %v784_v1 = vmul.f32 %v1446_v59, %v776_v63  ;;  %1306 = vmatprep.mubr.msk.f32.mxu1 %vm680_vm0, %v791_v62 }
 0x380   :  { %v792_v24 = vmul.f32 %v1761_v17, %v784_v1 }
 0x382   :  { %1307 = vmatmul.mubr.msk.f32.vlgmr.msra.gmra.mrb[20].mxu1 %vm680_vm0, %v792_v24 }
 0x43d   :  { %v1287_v2 = vpop.f32.mrb[14].mxu0 }
 0x43e   :  { %1118 = vst [vmem:[#allocation10 + $0x8] sm:$0xff] %v1287_v2  ;;  %v865_v3 = vpop.f32.mrb[15].mxu0 }
 0x43f   :  { %1117 = vst [vmem:[#allocation10] sm:$0xff] %v865_v3 }
 0x445   :  { %v1294_v4 = vpop.f32.mrb[18].mxu1 }
 0x446   :  { %1120 = vst [vmem:[#allocation10 + $0x18] sm:$0xff] %v1294_v4  ;;  %v946_v5 = vpop.f32.mrb[19].mxu1 }
 0x447   :  { %1119 = vst [vmem:[#allocation10 + $0x10] sm:$0xff] %v946_v5 }
 0x44d   :  { %v1301_v6 = vpop.f32.mrb[16].mxu0 }
 0x44e   :  { %1122 = vst [vmem:[#allocation10 + $0x28] sm:$0xff] %v1301_v6  ;;  %v1027_v7 = vpop.f32.mrb[17].mxu0 }
 0x44f   :  { %1121 = vst [vmem:[#allocation10 + $0x20] sm:$0xff] %v1027_v7 }
 0x455   :  { %v1308_v8 = vpop.f32.mrb[20].mxu1 }
 0x456   :  { %1124 = vst [vmem:[#allocation10 + $0x38] sm:$0xff] %v1308_v8  ;;  %v1108_v9 = vpop.f32.mrb[21].mxu1 }
 0x457   :  { %1123 = vst [vmem:[#allocation10 + $0x30] sm:$0xff] %v1108_v9 }
 0x458   :  { %1546 = shalt.err (!%p1543_p8)
}
 0x459   :  { %s1547_s30 = scalar_lea.hbm %s1802_s6, 1024 }
 0x45a   :  { %p1548_p9 = scmp.ne.s32.totalorder %s1802_s6, %s1547_s30  ;;  %p1551_p10 = scmp.lt.u32.totalorder %s1547_s30, %s1802_s6 }
 0x45c   :  { %p1553_p11 = pnand %p1551_p10, %p1548_p9 }
 0x45e   :  { %1556 = shalt.err (!%p1553_p11)
}
 0x45f   :  { %1136 = dma.vmem_to_hbm [thread:$0]  %s1131_s5, 1024, %s1802_s6, [#allocation4], %s1567_s9, %s1567_s9, %s1568_s10  }
 0x460   :  { %1563 = dma.done.wait [#allocation4], 1024  }
 0x461   :  { %1564 = vsyncadd [#allocation4], 4294966272 }
 0x462   :  { %1140 = vsyncpa [#allocation3], 1 }
 0x463   :  { %1141 = vsyncpa [#allocation6], 1 }
 0x464   :  { %1142 = vsyncpa [#allocation9], 1 }
 0x465   :  { %1143 = vsyncpa [#allocation4], 1 }

</bundles_post_ra>
